<compile_context>
chip_gen: v5e
topology: v5e:2x2
jax: 0.10.0
libtpu: 0.0.40
codegen_flags: <defaults>
</compile_context>

<pallas_src>
import jax
import jax.numpy as jnp
from jax import lax
from jax.experimental import pallas as pl
from jax.experimental.pallas import tpu as pltpu


def _make_dwconv_kernel(C: int, SB: int, ns: int):
    """Depthwise-3x3 kernel over an (H, W*C)-folded layout, strip-accumulated."""

    if ns <= 8:
        unroll = ns
    else:
        unroll = 1
        for d in (8, 4, 2):
            if ns % d == 0:
                unroll = d
                break

    def kernel(xc_ref, xu_ref, xd_ref, w_ref, b_ref, o_ref):
        # xc_ref: (1, TH, WC)  current tile of image rows
        # xu_ref: (1, HB, WC)  block whose LAST row is the row above the tile
        # xd_ref: (1, HB, WC)  block whose FIRST row is the row below the tile
        # w_ref : (9, WC) f32  taps, row k = ky*3+kx, pre-masked for the W border
        # b_ref : (1, WC) f32  bias, tiled W times
        # o_ref : (1, TH, WC)
        i = pl.program_id(1)
        n_t = pl.num_programs(1)
        TH = o_ref.shape[1]
        WC = o_ref.shape[2]
        HB = xu_ref.shape[1]
        f32 = jnp.float32

        # ---- per-tile constants (hoisted out of the strip loop) --------------
        up_keep = jnp.where(i == 0, 0.0, 1.0).astype(f32)          # pad=1 at image top
        dn_keep = jnp.where(i == n_t - 1, 0.0, 1.0).astype(f32)    # pad=1 at image bottom
        halo_top = xu_ref[0, HB - 1:HB, :].astype(f32) * up_keep   # row tile_start-1
        halo_bot = xd_ref[0, 0:1, :].astype(f32) * dn_keep         # row tile_start+TH
        taps = [w_ref[k, :] for k in range(9)]                     # (WC,) f32 each
        bias = b_ref[0, :]                                         # (WC,) f32
        row = lax.broadcasted_iota(jnp.int32, (SB, 1), 0)
        first_row = row == 0
        last_row = row == SB - 1

        def strip(s, carry):
            r0 = pl.multiple_of(s * SB, SB)
            cur = xc_ref[0, pl.ds(r0, SB), :].astype(f32)          # (SB, WC)
            # Rows just above / below this strip.  Loads are clamped in-bounds;
            # at the tile edges the select swaps in the halo row instead.
            up_row = xc_ref[0, pl.ds(jnp.maximum(r0 - 1, 0), 1), :].astype(f32)
            dn_row = xc_ref[0, pl.ds(jnp.minimum(r0 + SB, TH - 1), 1), :].astype(f32)
            above = jnp.where(s == 0, halo_top, up_row)            # (1, WC)
            below = jnp.where(s == ns - 1, halo_bot, dn_row)       # (1, WC)

            # Row-shifted strips via sublane rotation (XLU slot) + one-row select.
            x_up = jnp.where(first_row, above, pltpu.roll(cur, 1, axis=0))
            x_dn = jnp.where(last_row, below, pltpu.roll(cur, SB - 1, axis=0))

            # ky-sums per kx column.  The W-border masking is baked into the tap
            # vectors, so the lane rolls below need no extra masks.
            sum_l = x_up * taps[0] + cur * taps[3] + x_dn * taps[6]
            sum_c = x_up * taps[1] + cur * taps[4] + x_dn * taps[7]
            sum_r = x_up * taps[2] + cur * taps[5] + x_dn * taps[8]

            out = (pltpu.roll(sum_l, C, axis=1)          # (w-1) neighbour term
                   + sum_c
                   + pltpu.roll(sum_r, WC - C, axis=1)   # (w+1) neighbour term
                   + bias)
            o_ref[0, pl.ds(r0, SB), :] = out.astype(o_ref.dtype)
            return carry

        # TODO(synk): on v6e/v7x with bf16 inputs keep the tap multiplies in bf16
        # (f32 accumulate only) to use the bf16 VALU and halve vreg traffic.
        lax.fori_loop(0, ns, strip, 0, unroll=unroll)

    return kernel


def prepare_dwconv_params(weight, bias, W):
    """Fold (C,3,3) taps / (C,) bias into lane-dense, border-masked f32 vectors
    for the (H, W*C) layout.  Hoist this per layer when weights are reused."""
    C = weight.shape[0]
    WC = W * C
    w9 = jnp.transpose(weight.reshape(C, 9), (1, 0)).astype(jnp.float32)  # (9, C), k=ky*3+kx
    w_taps = jnp.tile(w9, (1, W))                                         # (9, WC)
    # Bake conv pad=1 along W into the taps: kx=0 taps must not contribute at
    # w=W-1 (they wrap to w=0 after the +C lane roll); kx=2 taps must not
    # contribute at w=0 (they wrap to w=W-1 after the -C lane roll).
    wcol = jnp.repeat(jnp.arange(W), C)                                   # (WC,) -> w index
    left_mask = (wcol != W - 1).astype(jnp.float32)
    right_mask = (wcol != 0).astype(jnp.float32)
    kxs = jnp.tile(jnp.arange(3), 3)                                      # kx of tap row k
    row_mask = jnp.where(kxs[:, None] == 0, left_mask[None, :],
                         jnp.where(kxs[:, None] == 2, right_mask[None, :], 1.0))
    w_taps = w_taps * row_mask
    b_t = jnp.tile(bias.astype(jnp.float32), W).reshape(1, WC)            # (1, WC)
    return w_taps, b_t


def _vmem_limit_bytes(TH, HB, WC, itemsize, SB):
    """Scoped-VMEM request: double-buffered blocks + strip temporaries, with
    headroom, capped at ~3/4 of this generation's physical VMEM."""
    cap = 128 * 2 ** 20
    try:
        cap = int(pltpu.get_tpu_info().vmem_capacity_bytes)
    except Exception:
        pass
    cap = (cap * 3) // 4                       # ~48 MiB on v7x, ~96 MiB on v5e/v6e
    blocks = 2 * ((2 * TH + 2 * HB) * WC * itemsize + 10 * WC * 4)
    temps = 12 * SB * WC * 4                   # strip-resident temporaries (generous)
    need = 2 * (blocks + temps) + (2 << 20)
    return int(min(max(need, min(32 * 2 ** 20, cap)), cap))


def dwconv(x, weight, bias, H, W, tile_h=None):
    """Matches MWFormer DWConv.forward.

    x: (B, N, C) with N == H*W; weight: (C, 3, 3); bias: (C,).  Returns (B, N, C).
    """
    B, N, C = x.shape
    assert N == H * W
    WC = W * C
    itemsize = jnp.dtype(x.dtype).itemsize

    # (B, N, C) -> (B, H, W*C): free regrouping; the TPU lane axis becomes W*C,
    # which stays dense even when C < 128 (best when W*C % 128 == 0).
    x2d = x.reshape(B, H, WC)

    # Per-layer constants (hoist this call / jit the wrapper for repeated use).
    w_taps, b_t = prepare_dwconv_params(weight, bias, W)

    # Sublane strip: 8 rows for 4-byte dtypes, 16 for 2-byte (bf16 packing).
    SB = max(8, 32 // max(itemsize, 1))
    row_bytes = WC * itemsize

    # ---- choose H tile size --------------------------------------------------
    if tile_h is None:
        TH = H
        if H % SB == 0 and H >= 2 * SB:
            budget = 4 << 20                              # ~4 MiB of input rows / tile
            max_rows = max(SB, budget // max(row_bytes, 1))
            cand = [d for d in range(SB, H, SB) if H % d == 0 and d <= max_rows]
            if cand:
                TH = max(cand)                            # biggest tile, but >= 2 tiles
    else:
        TH = tile_h
        assert H % TH == 0
        if H // TH > 1:
            assert TH % 8 == 0, "tiled path needs tile_h to be a multiple of 8"
    n_t = H // TH

    if TH % SB != 0:
        SB = 8 if TH % 8 == 0 else TH                     # fallback strip size
    ns = TH // SB

    HB = SB if (n_t > 1 or H % SB == 0) else H            # halo-block rows
    n_hb = H // HB
    thb = TH // HB

    kernel = _make_dwconv_kernel(C, SB, ns)
    vmem_limit = _vmem_limit_bytes(TH, HB, WC, itemsize, SB)

    out2d = pl.pallas_call(
        kernel,
        out_shape=jax.ShapeDtypeStruct((B, H, WC), x.dtype),
        grid_spec=pltpu.PrefetchScalarGridSpec(
            num_scalar_prefetch=0,
            grid=(B, n_t),
            in_specs=[
                pl.BlockSpec((1, TH, WC), lambda b, i: (b, i, 0)),
                pl.BlockSpec((1, HB, WC),
                             lambda b, i: (b, jnp.maximum(i * thb - 1, 0), 0)),
                pl.BlockSpec((1, HB, WC),
                             lambda b, i: (b, jnp.minimum((i + 1) * thb, n_hb - 1), 0)),
                pl.BlockSpec((9, WC), lambda b, i: (0, 0)),
                pl.BlockSpec((1, WC), lambda b, i: (0, 0)),
            ],
            out_specs=pl.BlockSpec((1, TH, WC), lambda b, i: (b, i, 0)),
        ),
        compiler_params=pltpu.CompilerParams(
            dimension_semantics=("parallel", "parallel"),
            vmem_limit_bytes=vmem_limit),
    )(x2d, x2d, x2d, w_taps, b_t)

    return out2d.reshape(B, H * W, C)


def _reference(x, weight, bias, H, W):
    """Pure-JAX reference matching the PyTorch forward (NCHW depthwise conv)."""
    B, N, C = x.shape
    x_nchw = jnp.transpose(x, (0, 2, 1)).reshape(B, C, H, W)
    w = weight.reshape(C, 1, 3, 3)  # (out_ch, in_ch/groups, kh, kw)
    y = lax.conv_general_dilated(
        x_nchw, w, window_strides=(1, 1), padding=((1, 1), (1, 1)),
        dimension_numbers=("NCHW", "OIHW", "NCHW"), feature_group_count=C)
    y = y + bias.reshape(1, C, 1, 1)
    return jnp.transpose(y.reshape(B, C, H * W), (0, 2, 1))


if __name__ == "__main__":
    key = jax.random.PRNGKey(0)
    B, C, H, W = 2, 32, 16, 16
    N = H * W
    kx_, kw_, kb_ = jax.random.split(key, 3)
    x = jax.random.normal(kx_, (B, N, C), dtype=jnp.float32)
    # deterministic synthetic params for nn.Conv2d(C, C, 3, 1, 1, bias=True, groups=C)
    weight = jax.random.normal(kw_, (C, 3, 3), dtype=jnp.float32) * 0.1
    bias = jax.random.normal(kb_, (C,), dtype=jnp.float32) * 0.1

    ref = _reference(x, weight, bias, H, W)

    # Auto tile path (TH=8, 2 H-tiles): exercises the cross-tile halo blocks.
    out = jax.block_until_ready(dwconv(x, weight, bias, H, W))
    assert out.shape == (B, N, C)
    assert jnp.allclose(out, ref, atol=1e-5, rtol=1e-5)

    # Single-tile, multi-strip path (TH=16, 2 strips): exercises in-tile rows.
    out_s = jax.block_until_ready(dwconv(x, weight, bias, H, W, tile_h=16))
    assert jnp.allclose(out_s, ref, atol=1e-5, rtol=1e-5)

    # A second geometry: 2 tiles x 2 strips each (halo + interior strips mixed).
    B2, C2, H2, W2 = 1, 32, 32, 8
    x2 = jax.random.normal(kx_, (B2, H2 * W2, C2), dtype=jnp.float32)
    w2 = jax.random.normal(kw_, (C2, 3, 3), dtype=jnp.float32) * 0.1
    b2 = jax.random.normal(kb_, (C2,), dtype=jnp.float32) * 0.1
    ref2 = _reference(x2, w2, b2, H2, W2)
    out2 = jax.block_until_ready(dwconv(x2, w2, b2, H2, W2))
    assert jnp.allclose(out2, ref2, atol=1e-5, rtol=1e-5)

    print("KERNEL_OK")
</pallas_src>

<mosaic_0001>
module attributes {stable_mosaic.version = 11 : i64} {
  func.func @kernel(%arg0: i32, %arg1: i32, %arg2: memref<1x8x512xf32, #tpu.memory_space<vmem>>, %arg3: memref<1x8x512xf32, #tpu.memory_space<vmem>>, %arg4: memref<1x8x512xf32, #tpu.memory_space<vmem>>, %arg5: memref<9x512xf32, #tpu.memory_space<vmem>>, %arg6: memref<1x512xf32, #tpu.memory_space<vmem>>, %arg7: memref<1x8x512xf32, #tpu.memory_space<vmem>>) attributes {dimension_semantics = [#tpu.dimension_semantics<parallel>, #tpu.dimension_semantics<parallel>], iteration_bounds = array<i64: 2, 2>, scalar_prefetch = 0 : i64, scratch_operands = 0 : i64, tpu.core_type = #tpu.core_type<tc>, window_params = [{transform_indices = @transform_0, window_bounds = array<i64: 1, 8, 512>}, {transform_indices = @transform_1, window_bounds = array<i64: 1, 8, 512>}, {transform_indices = @transform_2, window_bounds = array<i64: 1, 8, 512>}, {pipeline_mode = #tpu.pipeline_mode<synchronous>, transform_indices = @transform_3, window_bounds = array<i64: 9, 512>}, {pipeline_mode = #tpu.pipeline_mode<synchronous>, transform_indices = @transform_4, window_bounds = array<i64: 1, 512>}, {transform_indices = @transform_5, window_bounds = array<i64: 1, 8, 512>}]} {
    %c0_i32 = arith.constant 0 : i32
    %0 = arith.cmpi eq, %arg1, %c0_i32 : i32
    %cst = arith.constant 0.000000e+00 : f32
    %cst_0 = arith.constant 1.000000e+00 : f32
    %1 = arith.select %0, %cst, %cst_0 : f32
    %c1_i32 = arith.constant 1 : i32
    %2 = arith.cmpi eq, %arg1, %c1_i32 : i32
    %cst_1 = arith.constant 0.000000e+00 : f32
    %cst_2 = arith.constant 1.000000e+00 : f32
    %3 = arith.select %2, %cst_1, %cst_2 : f32
    %c0 = arith.constant 0 : index
    %c7 = arith.constant 7 : index
    %c0_3 = arith.constant 0 : index
    %4 = vector.load %arg3[%c0, %c7, %c0_3] : memref<1x8x512xf32, #tpu.memory_space<vmem>>, vector<1x1x512xf32>
    %5 = vector.shape_cast %4 : vector<1x1x512xf32> to vector<1x512xf32>
    %6 = vector.broadcast %1 : f32 to vector<1x512xf32>
    %7 = arith.mulf %5, %6 : vector<1x512xf32>
    %c0_4 = arith.constant 0 : index
    %c0_5 = arith.constant 0 : index
    %c0_6 = arith.constant 0 : index
    %8 = vector.load %arg4[%c0_4, %c0_5, %c0_6] : memref<1x8x512xf32, #tpu.memory_space<vmem>>, vector<1x1x512xf32>
    %9 = vector.shape_cast %8 : vector<1x1x512xf32> to vector<1x512xf32>
    %10 = vector.broadcast %3 : f32 to vector<1x512xf32>
    %11 = arith.mulf %9, %10 : vector<1x512xf32>
    %c0_7 = arith.constant 0 : index
    %c0_8 = arith.constant 0 : index
    %12 = vector.load %arg5[%c0_7, %c0_8] : memref<9x512xf32, #tpu.memory_space<vmem>>, vector<1x512xf32>
    %13 = vector.shape_cast %12 : vector<1x512xf32> to vector<512xf32>
    %c1 = arith.constant 1 : index
    %c0_9 = arith.constant 0 : index
    %14 = vector.load %arg5[%c1, %c0_9] : memref<9x512xf32, #tpu.memory_space<vmem>>, vector<1x512xf32>
    %15 = vector.shape_cast %14 : vector<1x512xf32> to vector<512xf32>
    %c2 = arith.constant 2 : index
    %c0_10 = arith.constant 0 : index
    %16 = vector.load %arg5[%c2, %c0_10] : memref<9x512xf32, #tpu.memory_space<vmem>>, vector<1x512xf32>
    %17 = vector.shape_cast %16 : vector<1x512xf32> to vector<512xf32>
    %c3 = arith.constant 3 : index
    %c0_11 = arith.constant 0 : index
    %18 = vector.load %arg5[%c3, %c0_11] : memref<9x512xf32, #tpu.memory_space<vmem>>, vector<1x512xf32>
    %19 = vector.shape_cast %18 : vector<1x512xf32> to vector<512xf32>
    %c4 = arith.constant 4 : index
    %c0_12 = arith.constant 0 : index
    %20 = vector.load %arg5[%c4, %c0_12] : memref<9x512xf32, #tpu.memory_space<vmem>>, vector<1x512xf32>
    %21 = vector.shape_cast %20 : vector<1x512xf32> to vector<512xf32>
    %c5 = arith.constant 5 : index
    %c0_13 = arith.constant 0 : index
    %22 = vector.load %arg5[%c5, %c0_13] : memref<9x512xf32, #tpu.memory_space<vmem>>, vector<1x512xf32>
    %23 = vector.shape_cast %22 : vector<1x512xf32> to vector<512xf32>
    %c6 = arith.constant 6 : index
    %c0_14 = arith.constant 0 : index
    %24 = vector.load %arg5[%c6, %c0_14] : memref<9x512xf32, #tpu.memory_space<vmem>>, vector<1x512xf32>
    %25 = vector.shape_cast %24 : vector<1x512xf32> to vector<512xf32>
    %c7_15 = arith.constant 7 : index
    %c0_16 = arith.constant 0 : index
    %26 = vector.load %arg5[%c7_15, %c0_16] : memref<9x512xf32, #tpu.memory_space<vmem>>, vector<1x512xf32>
    %27 = vector.shape_cast %26 : vector<1x512xf32> to vector<512xf32>
    %c8 = arith.constant 8 : index
    %c0_17 = arith.constant 0 : index
    %28 = vector.load %arg5[%c8, %c0_17] : memref<9x512xf32, #tpu.memory_space<vmem>>, vector<1x512xf32>
    %29 = vector.shape_cast %28 : vector<1x512xf32> to vector<512xf32>
    %c0_18 = arith.constant 0 : index
    %c0_19 = arith.constant 0 : index
    %30 = vector.load %arg6[%c0_18, %c0_19] : memref<1x512xf32, #tpu.memory_space<vmem>>, vector<1x512xf32>
    %31 = vector.shape_cast %30 : vector<1x512xf32> to vector<512xf32>
    %32 = tpu.iota {dimensions = array<i32: 0>} : vector<8x1xi32>
    %c0_i32_20 = arith.constant 0 : i32
    %33 = vector.broadcast %c0_i32_20 : i32 to vector<8x1xi32>
    %34 = arith.cmpi eq, %32, %33 : vector<8x1xi32>
    %c7_i32 = arith.constant 7 : i32
    %35 = vector.broadcast %c7_i32 : i32 to vector<8x1xi32>
    %36 = arith.cmpi eq, %32, %35 : vector<8x1xi32>
    %c0_i32_21 = arith.constant 0 : i32
    %c8_i32 = arith.constant 8 : i32
    %37 = arith.muli %c0_i32_21, %c8_i32 : i32
    %38 = tpu.assume_multiple %37, 8 : i32
    %c0_22 = arith.constant 0 : index
    %39 = arith.index_cast %38 : i32 to index
    %c0_23 = arith.constant 0 : index
    %40 = vector.load %arg2[%c0_22, %39, %c0_23] : memref<1x8x512xf32, #tpu.memory_space<vmem>>, vector<1x8x512xf32>
    %41 = vector.shape_cast %40 : vector<1x8x512xf32> to vector<8x512xf32>
    %c1_i32_24 = arith.constant 1 : i32
    %42 = arith.subi %38, %c1_i32_24 : i32
    %c0_i32_25 = arith.constant 0 : i32
    %43 = arith.maxsi %42, %c0_i32_25 : i32
    %c0_26 = arith.constant 0 : index
    %44 = arith.index_cast %43 : i32 to index
    %c0_27 = arith.constant 0 : index
    %45 = vector.load %arg2[%c0_26, %44, %c0_27] : memref<1x8x512xf32, #tpu.memory_space<vmem>>, vector<1x1x512xf32>
    %46 = vector.shape_cast %45 : vector<1x1x512xf32> to vector<1x512xf32>
    %c8_i32_28 = arith.constant 8 : i32
    %47 = arith.addi %38, %c8_i32_28 : i32
    %c7_i32_29 = arith.constant 7 : i32
    %48 = arith.minsi %47, %c7_i32_29 : i32
    %c0_30 = arith.constant 0 : index
    %49 = arith.index_cast %48 : i32 to index
    %c0_31 = arith.constant 0 : index
    %50 = vector.load %arg2[%c0_30, %49, %c0_31] : memref<1x8x512xf32, #tpu.memory_space<vmem>>, vector<1x1x512xf32>
    %51 = vector.shape_cast %50 : vector<1x1x512xf32> to vector<1x512xf32>
    %c0_i32_32 = arith.constant 0 : i32
    %52 = arith.cmpi eq, %c0_i32_21, %c0_i32_32 : i32
    %53 = arith.select %52, %7, %46 : vector<1x512xf32>
    %c0_i32_33 = arith.constant 0 : i32
    %54 = arith.cmpi eq, %c0_i32_21, %c0_i32_33 : i32
    %55 = arith.select %54, %11, %51 : vector<1x512xf32>
    %c1_i32_34 = arith.constant 1 : i32
    %56 = tpu.dynamic_rotate %41 by %c1_i32_34 dim 0 : vector<8x512xf32>, i32 -> vector<8x512xf32>
    %57 = vector.shape_cast %34 : vector<8x1xi1> to vector<8x1xi1>
    %58 = vector.broadcast %57 : vector<8x1xi1> to vector<8x512xi1>
    %59 = vector.shape_cast %53 : vector<1x512xf32> to vector<1x512xf32>
    %60 = vector.broadcast %59 : vector<1x512xf32> to vector<8x512xf32>
    %61 = arith.select %58, %60, %56 : vector<8x512xi1>, vector<8x512xf32>
    %c7_i32_35 = arith.constant 7 : i32
    %62 = tpu.dynamic_rotate %41 by %c7_i32_35 dim 0 : vector<8x512xf32>, i32 -> vector<8x512xf32>
    %63 = vector.shape_cast %36 : vector<8x1xi1> to vector<8x1xi1>
    %64 = vector.broadcast %63 : vector<8x1xi1> to vector<8x512xi1>
    %65 = vector.shape_cast %55 : vector<1x512xf32> to vector<1x512xf32>
    %66 = vector.broadcast %65 : vector<1x512xf32> to vector<8x512xf32>
    %67 = arith.select %64, %66, %62 : vector<8x512xi1>, vector<8x512xf32>
    %68 = vector.shape_cast %13 : vector<512xf32> to vector<1x512xf32>
    %69 = vector.broadcast %68 : vector<1x512xf32> to vector<8x512xf32>
    %70 = arith.mulf %61, %69 : vector<8x512xf32>
    %71 = vector.shape_cast %19 : vector<512xf32> to vector<1x512xf32>
    %72 = vector.broadcast %71 : vector<1x512xf32> to vector<8x512xf32>
    %73 = arith.mulf %41, %72 : vector<8x512xf32>
    %74 = arith.addf %70, %73 : vector<8x512xf32>
    %75 = vector.shape_cast %25 : vector<512xf32> to vector<1x512xf32>
    %76 = vector.broadcast %75 : vector<1x512xf32> to vector<8x512xf32>
    %77 = arith.mulf %67, %76 : vector<8x512xf32>
    %78 = arith.addf %74, %77 : vector<8x512xf32>
    %79 = vector.shape_cast %15 : vector<512xf32> to vector<1x512xf32>
    %80 = vector.broadcast %79 : vector<1x512xf32> to vector<8x512xf32>
    %81 = arith.mulf %61, %80 : vector<8x512xf32>
    %82 = vector.shape_cast %21 : vector<512xf32> to vector<1x512xf32>
    %83 = vector.broadcast %82 : vector<1x512xf32> to vector<8x512xf32>
    %84 = arith.mulf %41, %83 : vector<8x512xf32>
    %85 = arith.addf %81, %84 : vector<8x512xf32>
    %86 = vector.shape_cast %27 : vector<512xf32> to vector<1x512xf32>
    %87 = vector.broadcast %86 : vector<1x512xf32> to vector<8x512xf32>
    %88 = arith.mulf %67, %87 : vector<8x512xf32>
    %89 = arith.addf %85, %88 : vector<8x512xf32>
    %90 = vector.shape_cast %17 : vector<512xf32> to vector<1x512xf32>
    %91 = vector.broadcast %90 : vector<1x512xf32> to vector<8x512xf32>
    %92 = arith.mulf %61, %91 : vector<8x512xf32>
    %93 = vector.shape_cast %23 : vector<512xf32> to vector<1x512xf32>
    %94 = vector.broadcast %93 : vector<1x512xf32> to vector<8x512xf32>
    %95 = arith.mulf %41, %94 : vector<8x512xf32>
    %96 = arith.addf %92, %95 : vector<8x512xf32>
    %97 = vector.shape_cast %29 : vector<512xf32> to vector<1x512xf32>
    %98 = vector.broadcast %97 : vector<1x512xf32> to vector<8x512xf32>
    %99 = arith.mulf %67, %98 : vector<8x512xf32>
    %100 = arith.addf %96, %99 : vector<8x512xf32>
    %c32_i32 = arith.constant 32 : i32
    %101 = tpu.dynamic_rotate %78 by %c32_i32 dim 1 : vector<8x512xf32>, i32 -> vector<8x512xf32>
    %102 = arith.addf %101, %89 : vector<8x512xf32>
    %c480_i32 = arith.constant 480 : i32
    %103 = tpu.dynamic_rotate %100 by %c480_i32 dim 1 : vector<8x512xf32>, i32 -> vector<8x512xf32>
    %104 = arith.addf %102, %103 : vector<8x512xf32>
    %105 = vector.shape_cast %31 : vector<512xf32> to vector<1x512xf32>
    %106 = vector.broadcast %105 : vector<1x512xf32> to vector<8x512xf32>
    %107 = arith.addf %104, %106 : vector<8x512xf32>
    %c0_36 = arith.constant 0 : index
    %108 = arith.index_cast %38 : i32 to index
    %c0_37 = arith.constant 0 : index
    %109 = vector.load %arg7[%c0_36, %108, %c0_37] : memref<1x8x512xf32, #tpu.memory_space<vmem>>, vector<1x8x512xf32>
    %110 = vector.shape_cast %109 : vector<1x8x512xf32> to vector<8x512xf32>
    %111 = vector.shape_cast %107 : vector<8x512xf32> to vector<1x8x512xf32>
    tpu.vector_store %arg7[%c0_36, %108, %c0_37], %111 {strides = array<i32>} : memref<1x8x512xf32, #tpu.memory_space<vmem>>, vector<1x8x512xf32>,
    %c1_i32_38 = arith.constant 1 : i32
    return
  }
  func.func @transform_0(%arg0: i32, %arg1: i32) -> (i32, i32, i32) {
    %c0_i32 = arith.constant 0 : i32
    %c0_i32_0 = arith.constant 0 : i32
    return %arg0, %arg1, %c0_i32 : i32, i32, i32
  }
  func.func @transform_1(%arg0: i32, %arg1: i32) -> (i32, i32, i32) {
    %c1_i32 = arith.constant 1 : i32
    %0 = arith.muli %arg1, %c1_i32 : i32
    %c1_i32_0 = arith.constant 1 : i32
    %1 = arith.subi %0, %c1_i32_0 : i32
    %c0_i32 = arith.constant 0 : i32
    %2 = arith.maxsi %1, %c0_i32 : i32
    %c0_i32_1 = arith.constant 0 : i32
    %c0_i32_2 = arith.constant 0 : i32
    return %arg0, %2, %c0_i32_1 : i32, i32, i32
  }
  func.func @transform_2(%arg0: i32, %arg1: i32) -> (i32, i32, i32) {
    %c1_i32 = arith.constant 1 : i32
    %0 = arith.addi %arg1, %c1_i32 : i32
    %c1_i32_0 = arith.constant 1 : i32
    %1 = arith.muli %0, %c1_i32_0 : i32
    %c1_i32_1 = arith.constant 1 : i32
    %2 = arith.minsi %1, %c1_i32_1 : i32
    %c0_i32 = arith.constant 0 : i32
    %c0_i32_2 = arith.constant 0 : i32
    return %arg0, %2, %c0_i32 : i32, i32, i32
  }
  func.func @transform_3(%arg0: i32, %arg1: i32) -> (i32, i32) {
    %c0_i32 = arith.constant 0 : i32
    %c0_i32_0 = arith.constant 0 : i32
    %c0_i32_1 = arith.constant 0 : i32
    return %c0_i32, %c0_i32_0 : i32, i32
  }
  func.func @transform_4(%arg0: i32, %arg1: i32) -> (i32, i32) {
    %c0_i32 = arith.constant 0 : i32
    %c0_i32_0 = arith.constant 0 : i32
    %c0_i32_1 = arith.constant 0 : i32
    return %c0_i32, %c0_i32_0 : i32, i32
  }
  func.func @transform_5(%arg0: i32, %arg1: i32) -> (i32, i32, i32) {
    %c0_i32 = arith.constant 0 : i32
    %c0_i32_0 = arith.constant 0 : i32
    return %arg0, %arg1, %c0_i32 : i32, i32, i32
  }
}

</mosaic_0001>

<bundles_post_ra>
// kernel: tpu_custom_call.1
= control target key start
LH: loop header
LB: loop body
LE: loop exit
PB: predicated region body
PF: predicated region fallthrough
CT: control target
= control target key end

     0   :  { %s1876_s0 = inlined_call_operand.hbm [shape: f32[2,16,512], index: 0, kind: input, shape index: {}]   ;;  %s1877_s1 = inlined_call_operand.hbm [shape: f32[2,16,512], index: 1, kind: input, shape index: {}]   ;;  %s1878_s2 = inlined_call_operand.hbm [shape: f32[2,16,512], index: 2, kind: input, shape index: {}]   ;;  %s1879_s3 = inlined_call_operand.hbm [shape: f32[9,512], index: 3, kind: input, shape index: {}]   ;;  %s1880_s4 = inlined_call_operand.hbm [shape: f32[1,512], index: 4, kind: input, shape index: {}]   ;;  %s1881_s5 = inlined_call_operand.hbm [shape: f32[2,16,512], index: 5, kind: output, shape index: {}]  }
   0x1   :  { %1895 = sst [smem:[#allocation26_spill]] %s1876_s0 }
   0x2   :  { %1896 = sst [smem:[#allocation27_spill]] %s1877_s1 }
   0x3   :  { %1897 = sst [smem:[#allocation28_spill]] %s1878_s2 }
   0x4   :  { %1898 = sst [smem:[#allocation29_spill]] %s1879_s3 }
   0x5   :  { %1899 = sst [smem:[#allocation30_spill]] %s1880_s4 }
   0x6   :  { %1900 = sst [smem:[#allocation31_spill]] %s1881_s5 }
   0x7   :  { %10 = vsyncpa [#allocation3], 0 }
   0x8   :  { %12 = vsyncpa [#allocation3 + $0x1], 0 }
   0x9   :  { %13 = vsyncpa [#allocation6], 0 }
   0xa   :  { %15 = vsyncpa [#allocation6 + $0x1], 0 }
   0xb   :  { %16 = vsyncpa [#allocation9], 0 }
   0xc   :  { %17 = vsyncpa [#allocation4], 0 }
   0xd   :  { %19 = vsyncpa [#allocation4 + $0x1], 0  ;;  %s1395_s18 = smov 0   ;;  %s1397_s19 = smov 0  }
   0xe   :  { %s1399_s20 = smov 0   ;;  %s1401_s21 = smov 0  }
   0xf   :  { %s1403_s22 = smov 0   ;;  %s1405_s23 = smov 0  }
  0x10   :  { %s1407_s24 = smov 0   ;;  %s1409_s25 = smov 0  }
  0x11   :  { %s1411_s26 = smov 0   ;;  %s1413_s27 = smov 0  }
  0x12   :  { %s1415_s28 = smov 0   ;;  %s1417_s29 = smov 0  }
  0x13   :  { %s1419_s30 = smov 0   ;;  %s1421_s6 = smov 0  }
  0x14 LB: > { %1901 = sst [smem:[#allocation17_spill]] %s1321_s22  ;;  %s1466_s7 = sadd.s32 4294967295, %s1357_s6   ;;  %s1357_s6 = sphi %s1421_s6, %s25_s6   ;;  %s1353_s30 = sphi %s1419_s30, %s1956_s30   ;;  %s1349_s29 = sphi %s1417_s29, %s1945_s29   ;;  %s1345_s28 = sphi %s1415_s28, %s1955_s28   ;;  %s1341_s27 = sphi %s1413_s27, %s1944_s27   ;;  %s1337_s26 = sphi %s1411_s26, %s1954_s26   ;;  %s1333_s25 = sphi %s1409_s25, %s1953_s25   ;;  %s1329_s24 = sphi %s1407_s24, %s1952_s24   ;;  %s1325_s23 = sphi %s1405_s23, %s1951_s23   ;;  %s1321_s22 = sphi %s1403_s22, %s1942_s22   ;;  %s1317_s21 = sphi %s1401_s21, %s1941_s21   ;;  %s1313_s20 = sphi %s1399_s20, %s1950_s20   ;;  %s1309_s19 = sphi %s1397_s19, %s1949_s19   ;;  %s1305_s18 = sphi %s1395_s18, %s1948_s18  }
  0x15   : > { %1902 = sst [smem:[#allocation18_spill]] %s1325_s23  ;;  %p853_p0 = scmp.ge.s32.totalorder %s1357_s6, 1 }
  0x16   : > { %1903 = sst [smem:[#allocation19_spill]] %s1341_s27  ;;  %p1893_p1 = scmp.eq.s32.totalorder %s1466_s7, 0 }
  0x17   : > { %1904 = sst [smem:[#allocation20_spill]] %s1345_s28  ;;  %p208_p2 = scmp.lt.s32.totalorder %s1357_s6, 5 }
  0x18   : > { %1905 = sst [smem:[#allocation21_spill]] %s1349_s29  ;;  %s1359_s12 = smov [#allocation8]  }
  0x19   : > { %s1906_s3 = sld [smem:[#allocation29_spill]]  ;;  %p1474_p3 = pnand %p853_p0, %p208_p2 }
  0x1a   : > { %s221_s13 = sshll.u32 %s1359_s12, 4  ;;  %s1360_s15 = smov 512   ;;  %s222_s13 = int_to_ptr.vmem [resolvable:$true] %s221_s13 }
  0x1b   : > { %s1907_s11 = scalar_select %p1474_p3, 1, 0 }
  0x1c   : > { %p900_p4 = pneg %p1474_p3  ;;  %s1361_s16 = smov 32  }
  0x1d   : > { %1908 = sst [smem:[#allocation22_spill]] %s1907_s11  ;;  %s34_s17 = sadd.s32 1, %s1349_s29 }
  0x1e   : > { %p1482_p5 = pnand %p900_p4, %p1893_p1  ;;  %p35_p6 = scmp.ge.s32.totalorder %s34_s17, 2 }
  0x1f   : > { %s219_s10 = sshll.u32 %s1906_s3, 4  ;;  %s37_s8 = sadd.s32 1, %s1353_s30  ;;  %s220_s10 = int_to_ptr.hbm [resolvable:$true] %s219_s10 }
  0x20   : > { %903 = dma.hbm_to_vmem [thread:$0]  (!%p1482_p5), %s220_s10, 1024, %s222_s13, [#allocation9], %s1360_s15, %s1360_s15, %s1361_s16  }
  0x21   : > { %p54_p7 = scmp.eq.s32.totalorder %s1357_s6, 0  ;;  %s1958_s17 = smov (%p35_p6, %s34_s17), 0 }
  0x22   : > { %1910 = sst [smem:[#allocation23_spill]] %s1958_s17  ;;  %s1960_s8 = smov (!%p35_p6, %s37_s8), %s1353_s30 }
  0x23   : > { %s42_s9 = ssub.s32 %s1349_s29, %s1958_s17  ;;  %p39_p8 = scmp.ge.s32.totalorder %s1960_s8, 2 }
  0x24   : > { %s80_s10 = sadd.s32 1, %s1325_s23  ;;  %p87_p9 = scmp.ne.s32.totalorder %s1325_s23, %s1321_s22 }
  0x25   : > { %s1962_s8 = smov (%p39_p8, %s1960_s8), 0  ;;  %p93_p10 = scmp.ne.s32.totalorder %s1321_s22, %s1317_s21 }
  0x26   : > { %1911 = sst [smem:[#allocation24_spill]] %s1962_s8  ;;  %s1501_s12 = ssub.s32 %s1353_s30, %s1962_s8 }
  0x27   : > { %s1506_s13 = sor.u32 %s42_s9, %s1501_s12  ;;  %p1513_p12 = por %p87_p9, %p54_p7 }
  0x28   : > { %p44_p11 = scmp.eq.s32.totalorder %s1506_s13, 0  ;;  %p1519_p13 = por %p93_p10, %p1893_p1 }
  0x29   : > { %p1892_p0 = scmp.lt.s32.totalorder %s1357_s6, 4  ;;  %s269_s8 = sand.u32 1, %s1357_s6  }
  0x2a   : > { %p1891_p2 = scmp.eq.s32.totalorder %s1501_s12, 0  ;;  %s271_s9 = sand.u32 1, %s1325_s23  }
  0x2b   : > { %s861_s17 = sshll.u32 %s271_s9, 5  ;;  %s1890_s5 = sshll.u32 %s1353_s30, 6 }
  0x2c   : > { %s1531_s21 = scalar_select %p1891_p2, %s1325_s23, %s80_s10  }
  0x2d   : > { %s1915_s1 = sld [smem:[#allocation27_spill]]  ;;  %s273_s11 = scalar_lea.vmem [#allocation5], %s861_s17 }
  0x2e   : > { %1914 = sst [smem:[#allocation25_spill]] %s1531_s21  ;;  %s287_s2 = sshll.u32 %s273_s11, 4  ;;  %s288_s2 = int_to_ptr.vmem [resolvable:$true] %s287_s2 }
  0x2f   : > { %p1543_p4 = pnand %p1892_p0, %p1513_p12  ;;  %s1917_s4 = sld [smem:[#allocation30_spill]] }
  0x30   : > { %s1550_s23 = scalar_lea.sflag [#allocation6], %s269_s8 }
  0x31   : > { %p1079_p8 = pneg %p1543_p4 }
  0x33   : > { %s283_s22 = scalar_lea.hbm %s1915_s1, %s1890_s5  ;;  %s1082_s17 = scalar_lea.hbm %s1915_s1, 128 }
  0x34   : > { %s285_s0 = sshll.u32 %s283_s22, 4  ;;  %s286_s0 = int_to_ptr.hbm [resolvable:$true] %s285_s0 }
  0x35   : > { %s234_s9 = sshll.u32 %s1917_s4, 4  ;;  %s1075_s27 = sshra.s32 %s286_s0, 4  ;;  %s235_s9 = int_to_ptr.hbm [resolvable:$true] %s234_s9  ;;  %s1076_s27 = int_to_ptr.hbm [resolvable:$true] %s1075_s27 }
  0x36   : > { %s1077_s28 = scalar_lea.hbm %s1076_s27, 32  ;;  %p1083_p12 = scmp.lt.s32.totalorder %s1076_s27, %s1915_s1 }
  0x37   : > { %p1078_p6 = scmp.ne.s32.totalorder %s1076_s27, %s1077_s28  ;;  %p1084_p2 = scmp.lt.s32.totalorder %s1082_s17, %s1077_s28 }
  0x39   : > { %p1080_p9 = pnand %p1079_p8, %p1078_p6  ;;  %p1085_p0 = por %p1084_p2, %p1083_p12 }
  0x3b   : > { %p1081_p10 = pneg %p1080_p9 }
  0x3d   : > { %p1086_p1 = pnand %p1085_p0, %p1081_p10 }
  0x3f   : > { %1089 = shalt.err (!%p1086_p1)
}
  0x40   : > { %913 = dma.hbm_to_vmem [thread:$0]  (!%p1543_p4), %s286_s0, 512, %s288_s2, %s1550_s23  }
  0x41   : > { %s1362_s5 = smov [#allocation10]   ;;  %s850_s3 = sadd.s32 4294967294, %s1357_s6  }
  0x42   : > { %s236_s8 = sshll.u32 %s1362_s5, 4  ;;  %s46_s21 = sadd.s32 1, %s1337_s26  ;;  %s237_s8 = int_to_ptr.vmem [resolvable:$true] %s236_s8 }
  0x43   : > { %906 = dma.hbm_to_vmem [thread:$0]  (!%p1482_p5), %s235_s9, 64, %s237_s8, [#allocation9]  }
  0x44   : > { %s1570_s10 = scalar_select %p44_p11, %s1337_s26, %s46_s21  }
  0x45   : > { %p53_p1 = scmp.ne.s32.totalorder %s1337_s26, %s1333_s25  ;;  %p59_p0 = scmp.ne.s32.totalorder %s1333_s25, %s1329_s24 }
  0x46   : > { %p195_p2 = scmp.eq.s32.totalorder %s1466_s7, 3  ;;  %p201_p6 = scmp.eq.s32.totalorder %s850_s3, 3 }
  0x47   : > { %p1579_p4 = por %p54_p7, %p53_p1  ;;  %p1919_p8 = scmp.eq.s32.totalorder %s1466_s7, 0 }
  0x48   : > { %p1589_p5 = por %p195_p2, %p53_p1  ;;  %p1593_p11 = por %p201_p6, %p59_p0 }
  0x49   : > { %p1585_p9 = por %p1919_p8, %p59_p0  ;;  %s247_s9 = sand.u32 1, %s1337_s26  }
  0x4a   : > { %s1922_s13 = scalar_select %p1593_p11, 1, 0 }
  0x4b   : > { %s858_s27 = sshll.u32 %s1349_s29, 2  ;;  %s857_s28 = sshll.u32 %s247_s9, 5 }
  0x4c   : > { %s1923_s22 = sshll.u32 %s1353_s30, 3  ;;  %s251_s15 = scalar_lea.vmem [#allocation2], %s857_s28 }
  0x4d   : > { %s256_s11 = sadd.s32 %s1923_s22, %s858_s27  ;;  %s262_s5 = sshll.u32 %s251_s15, 4  ;;  %s263_s5 = int_to_ptr.vmem [resolvable:$true] %s262_s5 }
  0x4e   : > { %s860_s17 = sshll.u32 %s256_s11, 3  ;;  %s1924_s21 = sld [smem:[#allocation26_spill]] }
  0x4f   : > { %p1925_p10 = scmp.lt.s32.totalorder %s1357_s6, 4  ;;  %s248_s29 = scalar_lea.sflag [#allocation3], %s247_s9 }
  0x50   : > { %s114_s27 = sadd.s32 1, %s1313_s20  ;;  %p121_p1 = scmp.ne.s32.totalorder %s1313_s20, %s1309_s19 }
  0x51   : > { %p908_p12 = pnand %p1925_p10, %p1579_p4  ;;  %p127_p0 = scmp.ne.s32.totalorder %s1309_s19, %s1305_s18 }
  0x52   : > { %s296_s28 = sand.u32 1, %s1313_s20   ;;  %p123_p2 = por %p121_p1, %p54_p7 }
  0x53   : > { %p1926_p6 = pmov %p1919_p8  ;;  %s866_s11 = sshll.u32 %s296_s28, 5 }
  0x54   : > { %s258_s1 = scalar_lea.hbm %s1924_s21, %s860_s17  ;;  %p1928_p11 = scmp.eq.s32.totalorder %s1501_s12, 0 }
  0x55   : > { %s260_s4 = sshll.u32 %s258_s1, 4  ;;  %p1618_p8 = por %p127_p0, %p1926_p6  ;;  %s261_s4 = int_to_ptr.hbm [resolvable:$true] %s260_s4 }
  0x56   : > { %910 = dma.hbm_to_vmem [thread:$0]  (!%p908_p12), %s261_s4, 512, %s263_s5, %s248_s29  }
  0x57   : > { %s1625_s1 = scalar_select %p1928_p11, %s1313_s20, %s114_s27  }
  0x58   : > { %s1929_s0 = sshll.u32 %s1353_s30, 6  ;;  %s298_s9 = scalar_lea.vmem [#allocation7], %s866_s11 }
  0x59   : > { %s1301_s17 = sadd.s32 32, %s1929_s0  ;;  %s312_s15 = sshll.u32 %s298_s9, 4  ;;  %s313_s15 = int_to_ptr.vmem [resolvable:$true] %s312_s15 }
  0x5a   : > { %s1930_s5 = sld [smem:[#allocation28_spill]]  ;;  %p1931_p7 = pmov %p1925_p10 }
  0x5c   : > { %p914_p4 = pnand %p1931_p7, %p123_p2 }
  0x5e   : > { %p1169_p12 = pneg %p914_p4 }
  0x60   : > { %s308_s18 = scalar_lea.hbm %s1930_s5, %s1301_s17  ;;  %s1172_s28 = scalar_lea.hbm %s1930_s5, 128 }
  0x61   : > { %s310_s8 = sshll.u32 %s308_s18, 4  ;;  %s311_s8 = int_to_ptr.hbm [resolvable:$true] %s310_s8 }
  0x62   : > { %s1165_s3 = sshra.s32 %s311_s8, 4  ;;  %s1166_s3 = int_to_ptr.hbm [resolvable:$true] %s1165_s3 }
  0x63   : > { %s1167_s21 = scalar_lea.hbm %s1166_s3, 32 }
  0x64   : > { %p1168_p10 = scmp.ne.s32.totalorder %s1166_s3, %s1167_s21  ;;  %p1174_p0 = scmp.lt.s32.totalorder %s1172_s28, %s1167_s21 }
  0x66   : > { %p1170_p11 = pnand %p1169_p12, %p1168_p10 }
  0x68   : > { %p1171_p1 = pneg %p1170_p11 }
  0x6a   : > { %p1176_p6 = pnand %p1174_p0, %p1171_p1 }
  0x6c   : > { %1179 = shalt.err (!%p1176_p6)
}
  0x6d   : > { %916 = dma.hbm_to_vmem [thread:$0]  (!%p914_p4), %s311_s8, 512, %s313_s15, %s1550_s23  }
  0x6e   : > { %321 = sbr.rel (%p1474_p3) target bundleno = 296 (0x128), region = 40  ;;  %s1641_s0 = sand.u32 (!%p1474_p3), 1, %s1333_s25  }
  0x6f   : > { %s871_s17 = sshll.u32 (!%p1474_p3), %s1641_s0, 5  ;;  %s324_s9 = scalar_lea.sflag (!%p1474_p3), [#allocation3], %s1641_s0 }
  0x70   : > { %s1647_s4 = scalar_lea.vmem (!%p1474_p3), [#allocation2], %s871_s17 }
  0x73   : > { %1280 = dma.done.wait (%p1585_p9), %s324_s9, 512  }
  0x74   : > { %1282 = vsyncadd (%p1585_p9), %s324_s9, 4294966784  ;;  %s1933_s23 = sld [smem:[#allocation17_spill]]  ;;  %s333_s15 = sand.u32 1, %s1466_s7  }
  0x75   : > { %s334_s8 = scalar_lea.sflag [#allocation6], %s333_s15 }
  0x7a   : > { %s335_s29 = sand.u32 1, %s1933_s23  }
  0x7b   : > { %s872_s18 = sshll.u32 %s335_s29, 5 }
  0x7c   : > { %s337_s3 = scalar_lea.vmem [#allocation5], %s872_s18 }
  0x7d   : > { %1284 = dma.done.wait (%p1519_p13), %s334_s8, 512  }
  0x7e   : > { %1286 = vsyncadd (%p1519_p13), %s334_s8, 4294966784  ;;  %s345_s21 = sand.u32 1, %s1309_s19  }
  0x7f   : > { %s873_s12 = sshll.u32 %s345_s21, 5 }
  0x80   : > { %s347_s27 = scalar_lea.vmem [#allocation7], %s873_s12 }
  0x81   : > { %1288 = dma.done.wait (%p1618_p8), %s334_s8, 512  }
  0x82   : > { %1290 = vsyncadd (%p1618_p8), %s334_s8, 4294966784  ;;  %p1934_p3 = scmp.eq.s32.totalorder %s1466_s7, 0 }
  0x84   : > { %1292 = dma.done.wait (%p1934_p3), [#allocation9], 1088   ;;  %p1935_p9 = pmov %p1934_p3 }
  0x85   : > { %s1936_s2 = sld [smem:[#allocation19_spill]]  ;;  %v430_v0 = vlaneseq  ;;  %v877_v4 = vld [vmem:[%s337_s3 + $0x7] ss:$8 sm:$0xf]  ;;  %s1363_s7 = smov 32  }
  0x86   : > { %1294 = vsyncadd (%p1935_p9), [#allocation9], 4294966208  ;;  %v409_v5 = vld [vmem:[%s347_s27] ss:$8 sm:$0xf]  ;;  %s1364_s22 = smov 96  }
  0x87   : > { %v1671_v1 = vshrl.u32 %v430_v0, 7  ;;  %v1679_v8 = vld [vmem:[#allocation8] ss:$8 sm:$0xf]  ;;  %s1937_s11 = sld [smem:[#allocation20_spill]]  ;;  %s394_s29 = scalar_lea.vmem [#allocation11], %s871_s17 }
  0x88   : > { %v1681_v9 = vld [vmem:[#allocation8 + $0x3] ss:$8 sm:$0xf]  ;;  %v1683_v10 = vld [vmem:[#allocation8 + $0x6] ss:$8 sm:$0xf] }
  0x89   : > { %vm432_vm0 = vcmp.eq.s32.totalorder %v1671_v1, 0  ;;  %vm433_vm1 = vcmp.eq.s32.totalorder %v1671_v1, 7  ;;  %v1686_v11 = vld [vmem:[%s1647_s4 + $0x10] sm:$0xff]  ;;  %v482_v12 = vperm.slane %v1679_v8, 2  ;;  %v495_v13 = vperm.slane %v1681_v9, 2  ;;  %v1695_v18 = vld [vmem:[%s1647_s4] sm:$0xff] }
  0x8a   : > { %v443_v14 = vrot.slane %v1686_v11, 7  ;;  %v462_v16 = vrot.slane %v1686_v11, 1  ;;  %v512_v20 = vperm.slane %v1683_v10, 2  ;;  %v441_v21 = vrot.slane %v1695_v18, 7  ;;  %v1702_v23 = vld [vmem:[%s1647_s4 + $0x18] sm:$0xff]  ;;  %v1732_v40 = vld [vmem:[%s1647_s4 + $0x8] sm:$0xff] }
  0x8b   : > { %p401_p2 = scmp.eq.s32.totalorder %s1936_s2, 0  ;;  %p403_p13 = scmp.eq.s32.totalorder %s1936_s2, 1  ;;  %v503_v19 = vmul.f32 %v495_v13, %v1686_v11  ;;  %v460_v26 = vrot.slane %v1695_v18, 1  ;;  %v480_v31 = vperm.slane %v1679_v8, 0  ;;  %v493_v33 = vperm.slane %v1681_v9, 0 }
  0x8c   : > { %v510_v34 = vperm.slane %v1683_v10, 0  ;;  %v444_v35 = vrot.slane %v1702_v23, 7  ;;  %v463_v39 = vrot.slane %v1702_v23, 1  ;;  %v483_v44 = vperm.slane %v1679_v8, 3  ;;  %s879_s9 = sshll.u32 %s1936_s2, 2  ;;  %s1938_s3 = sld [smem:[#allocation31_spill]] }
  0x8d   : > { %s402_s16 = scalar_select %p401_p2, 0.0, 1.0  ;;  %v501_v41 = vmul.f32 %v493_v33, %v1695_v18  ;;  %v496_v47 = vperm.slane %v1681_v9, 3  ;;  %v513_v48 = vperm.slane %v1683_v10, 3  ;;  %v442_v52 = vrot.slane %v1732_v40, 7 }
  0x8e   : > { %s404_s28 = scalar_select %p403_p13, 0.0, 1.0  ;;  %v416_v53 = vld [vmem:[#allocation8 + $0x2] ss:$8 sm:$0xf]  ;;  %v461_v57 = vrot.slane %v1732_v40, 1 }
  0x8f   : > { %v407_v2 = vstv %s402_s16  ;;  %v504_v54 = vmul.f32 %v496_v47, %v1702_v23  ;;  %v422_v58 = vld [vmem:[#allocation8 + $0x5] ss:$8 sm:$0xf]  ;;  %v481_v61 = vperm.slane %v1679_v8, 1  ;;  %v494_v62 = vperm.slane %v1681_v9, 1  ;;  %s880_s4 = sshll.u32 %s1937_s11, 3 }
  0x90   : > { %v410_v3 = vstv %s404_s28  ;;  %v1675_v6 = vmul.f32 %v877_v4, %v407_v2  ;;  %v428_v63 = vld [vmem:[#allocation8 + $0x20] ss:$8 sm:$0xf]  ;;  %v511_v4 = vperm.slane %v1683_v10, 1  ;;  %v590_v9 = vperm.slane %v422_v58, 3  ;;  %s687_s23 = sadd.s32 %s880_s4, %s879_s9  ;;  %s691_s17 = sshll.u32 %s394_s29, 4  ;;  %s692_s17 = int_to_ptr.vmem [resolvable:$true] %s691_s17 }
  0x91   : > { %v1677_v7 = vmul.f32 %v410_v3, %v409_v5  ;;  %v577_v5 = vperm.slane %v416_v53, 3  ;;  %v502_v8 = vmul.f32 %v494_v62, %v1732_v40  ;;  %s881_s15 = sshll.u32 %s687_s23, 3  ;;  %s676_s27 = scalar_lea.sflag [#allocation4], %s1641_s0 }
  0x92   : > { %v450_v15 = vperm.slane %v1675_v6, 2  ;;  %v448_v22 = vperm.slane %v1675_v6, 0  ;;  %v451_v38 = vperm.slane %v1675_v6, 3  ;;  %v449_v56 = vperm.slane %v1675_v6, 1  ;;  %s689_s21 = scalar_lea.hbm %s1938_s3, %s881_s15 }
  0x93   : > { %v469_v17 = vperm.slane %v1677_v7, 2  ;;  %v467_v27 = vperm.slane %v1677_v7, 0  ;;  %v470_v43 = vperm.slane %v1677_v7, 3  ;;  %v468_v60 = vperm.slane %v1677_v7, 1  ;;  %s693_s12 = sshll.u32 %s689_s21, 4  ;;  %s694_s12 = int_to_ptr.hbm [resolvable:$true] %s693_s12 }
  0x94   : > { %v1706_v24 = vsel %vm432_vm0, %v450_v15, %v443_v14  ;;  %v1718_v30 = vsel %vm432_vm0, %v448_v22, %v441_v21  ;;  %v1740_v46 = vsel %vm432_vm0, %v451_v38, %v444_v35  ;;  %v1760_v3 = vsel %vm432_vm0, %v449_v56, %v442_v52  ;;  %s1209_s2 = sshra.s32 %s694_s12, 4  ;;  %s1210_s2 = int_to_ptr.hbm [resolvable:$true] %s1209_s2 }
  0x95   : > { %v1710_v25 = vsel %vm433_vm1, %v469_v17, %v462_v16  ;;  %v490_v28 = vmul.f32 %v482_v12, %v1706_v24  ;;  %v1723_v32 = vsel %vm433_vm1, %v467_v27, %v460_v26  ;;  %v488_v37 = vmul.f32 %v480_v31, %v1718_v30  ;;  %s1211_s16 = scalar_lea.hbm %s1210_s2, 32  ;;  %p1216_p10 = scmp.lt.s32.totalorder %s1210_s2, %s1938_s3 }
  0x96   : > { %v520_v29 = vmul.f32 %v512_v20, %v1710_v25  ;;  %v518_v42 = vmul.f32 %v510_v34, %v1723_v32  ;;  %v1746_v50 = vsel %vm433_vm1, %v470_v43, %v463_v39  ;;  %v491_v51 = vmul.f32 %v483_v44, %v1740_v46  ;;  %p1212_p8 = scmp.ne.s32.totalorder %s1210_s2, %s1211_s16 }
  0x97   : > { %v507_v36 = vadd.f32 %v503_v19, %v490_v28  ;;  %v505_v49 = vadd.f32 %v501_v41, %v488_v37  ;;  %v521_v55 = vmul.f32 %v513_v48, %v1746_v50  ;;  %v1766_v6 = vsel %vm433_vm1, %v468_v60, %v461_v57  ;;  %v426_v57 = vld [vmem:[#allocation8 + $0x7] ss:$8 sm:$0xf] }
  0x98   : > { %v508_v2 = vadd.f32 %v504_v54, %v491_v51  ;;  %v489_v7 = vmul.f32 %v481_v61, %v1760_v3  ;;  %v519_v13 = vmul.f32 %v511_v4, %v1766_v6  ;;  %v585_v14 = vmul.f32 %v577_v5, %v1740_v46  ;;  %v420_v54 = vld [vmem:[#allocation8 + $0x4] ss:$8 sm:$0xf]  ;;  %p1213_p7 = pnand %p1212_p8, %p1589_p5 }
  0x99   : > { %v524_v45 = vadd.f32 %v520_v29, %v507_v36  ;;  %v522_v59 = vadd.f32 %v518_v42, %v505_v49  ;;  %v607_v15 = vperm.slane %v428_v63, 3  ;;  %v598_v10 = vmul.f32 %v590_v9, %v1702_v23 }
  0x9a   : > { %v525_v12 = vadd.f32 %v521_v55, %v508_v2  ;;  %v506_v16 = vadd.f32 %v502_v8, %v489_v7  ;;  %v576_v17 = vperm.slane %v416_v53, 2  ;;  %v589_v19 = vperm.slane %v422_v58, 2  ;;  %p1214_p4 = pneg %p1213_p7 }
  0x9b   : > { %624 = vrot.lane.b32.xlu1 %v524_v45, %s1363_s7  ;;  %620 = vrot.lane.b32.xlu0 %v522_v59, %s1363_s7  ;;  %v615_v1 = vmul.f32 %v607_v15, %v1746_v50  ;;  %v574_v20 = vperm.slane %v416_v53, 0  ;;  %v587_v21 = vperm.slane %v422_v58, 0  ;;  %v606_v28 = vperm.slane %v428_v63, 2 }
  0x9c   : > { %v523_v22 = vadd.f32 %v519_v13, %v506_v16  ;;  %v584_v26 = vmul.f32 %v576_v17, %v1706_v24  ;;  %v597_v27 = vmul.f32 %v589_v19, %v1686_v11  ;;  %v602_v29 = vadd.f32 %v598_v10, %v585_v14  ;;  %v429_v17 = vld [vmem:[#allocation10] sm:$0xf] }
  0x9d   : > { %v582_v31 = vmul.f32 %v574_v20, %v1718_v30  ;;  %v595_v33 = vmul.f32 %v587_v21, %v1695_v18  ;;  %v604_v34 = vperm.slane %v428_v63, 0  ;;  %v575_v35 = vperm.slane %v416_v53, 1  ;;  %v414_v53 = vld [vmem:[#allocation8 + $0x1] ss:$8 sm:$0xf] }
  0x9e   : > { %v588_v36 = vperm.slane %v422_v58, 1  ;;  %v605_v39 = vperm.slane %v428_v63, 1  ;;  %v601_v41 = vadd.f32 %v597_v27, %v584_v26  ;;  %v614_v42 = vmul.f32 %v606_v28, %v1710_v25 }
  0x9f   : > { %v599_v37 = vadd.f32 %v595_v33, %v582_v31  ;;  %v612_v38 = vmul.f32 %v604_v34, %v1723_v32  ;;  %v583_v43 = vmul.f32 %v575_v35, %v1760_v3  ;;  %v619_v45 = vadd.f32 %v615_v1, %v602_v29 }
  0xa0   : > { %v596_v44 = vmul.f32 %v588_v36, %v1732_v40  ;;  %v613_v49 = vmul.f32 %v605_v39, %v1766_v6  ;;  %v618_v51 = vadd.f32 %v614_v42, %v601_v41  ;;  %v527_v55 = vperm.slane %v414_v53, 0 }
  0xa1   : > { %v616_v47 = vadd.f32 %v612_v38, %v599_v37  ;;  %v540_v56 = vperm.slane %v420_v54, 0  ;;  %v557_v60 = vperm.slane %v426_v57, 0  ;;  %v530_v63 = vperm.slane %v414_v53, 3 }
  0xa2   : > { %v600_v48 = vadd.f32 %v596_v44, %v583_v43  ;;  %v535_v61 = vmul.f32 %v527_v55, %v1718_v30  ;;  %v543_v2 = vperm.slane %v420_v54, 3  ;;  %v629_v5 = vand.u32 127, %v430_v0 }
  0xa3   : > { %626 = vrot.lane.b32.xlu1 %v525_v12, %s1363_s7  ;;  %622 = vrot.lane.b32.xlu0 %v523_v22, %s1363_s7  ;;  %v548_v59 = vmul.f32 %v540_v56, %v1695_v18  ;;  %v565_v4 = vmul.f32 %v557_v60, %v1723_v32  ;;  %v528_v8 = vperm.slane %v414_v53, 1  ;;  %v529_v12 = vperm.slane %v414_v53, 2 }
  0xa4   : > { %639 = vrot.lane.b32.xlu2 %v616_v47, %s1364_s22  ;;  %v617_v52 = vadd.f32 %v613_v49, %v600_v48  ;;  %v541_v13 = vperm.slane %v420_v54, 1  ;;  %v542_v14 = vperm.slane %v420_v54, 2  ;;  %v538_v15 = vmul.f32 %v530_v63, %v1740_v46 }
  0xa5   : > { %v552_v7 = vadd.f32 %v548_v59, %v535_v61  ;;  %v551_v18 = vmul.f32 %v543_v2, %v1702_v23  ;;  %v560_v16 = vperm.slane %v426_v57, 3  ;;  %vm630_vm2 = vcmp.lt.s32.totalorder %v629_v5, 32 }
  0xa6   : > { %v536_v10 = vmul.f32 %v528_v8, %v1760_v3  ;;  %v558_v32 = vperm.slane %v426_v57, 1  ;;  %v537_v0 = vmul.f32 %v529_v12, %v1706_v24  ;;  %v549_v19 = vmul.f32 %v541_v13, %v1732_v40 }
  0xa7   : > { %v569_v30 = vadd.f32 %v565_v4, %v552_v7  ;;  %v550_v1 = vmul.f32 %v542_v14, %v1686_v11  ;;  %v559_v20 = vperm.slane %v426_v57, 2  ;;  %v555_v21 = vadd.f32 %v551_v18, %v538_v15 }
  0xa8   : > { %v568_v46 = vmul.f32 %v560_v16, %v1746_v50  ;;  %vm647_vm3 = vcmp.lt.s32.totalorder %v629_v5, 96  ;;  %v657_v27 = vperm.slane %v429_v17, 0  ;;  %v566_v24 = vmul.f32 %v558_v32, %v1766_v6 }
  0xa9   : > { %v553_v28 = vadd.f32 %v549_v19, %v536_v10  ;;  %v554_v11 = vadd.f32 %v550_v1, %v537_v0  ;;  %v567_v29 = vmul.f32 %v559_v20, %v1710_v25  ;;  %v660_v41 = vperm.slane %v429_v17, 3 }
  0xaa   : > { %v572_v50 = vadd.f32 %v568_v46, %v555_v21  ;;  %v658_v47 = vperm.slane %v429_v17, 1  ;;  %v659_v48 = vperm.slane %v429_v17, 2 }
  0xab   : > { %645 = vrot.lane.b32.xlu1 %v619_v45, %s1364_s22  ;;  %643 = vrot.lane.b32.xlu0 %v618_v51, %s1364_s22  ;;  %v570_v36 = vadd.f32 %v566_v24, %v553_v28  ;;  %v571_v37 = vadd.f32 %v567_v29, %v554_v11 }
  0xac   : > { %641 = vrot.lane.b32.xlu2 %v617_v52, %s1364_s22  ;;  %s1215_s22 = scalar_lea.hbm %s1938_s3, 128 }
  0xad   : > { %p1217_p12 = scmp.lt.s32.totalorder %s1215_s22, %s1211_s16 }
  0xaf   : > { %p1218_p11 = por %p1217_p12, %p1216_p10 }
  0xb1   : > { %p1219_p1 = pnand %p1218_p11, %p1214_p4 }
  0xfe   : > { %v640_v58 = vpop.permute.xlu2 %639 }
 0x106   : > { %v642_v22 = vpop.permute.xlu2 %641 }
 0x107   : > { %v650_v40 = vsel %vm647_vm3, %v640_v58, %v642_v22 }
 0x10d   : > { %v625_v62 = vpop.permute.xlu1 %624  ;;  %v621_v9 = vpop.permute.xlu0 %620 }
 0x115   : > { %v627_v23 = vpop.permute.xlu1 %626  ;;  %v623_v31 = vpop.permute.xlu0 %622 }
 0x116   : > { %v634_v26 = vsel %vm630_vm2, %v627_v23, %v621_v9  ;;  %v631_v34 = vsel %vm630_vm2, %v625_v62, %v627_v23  ;;  %v632_v6 = vsel %vm630_vm2, %v623_v31, %v625_v62  ;;  %v633_v39 = vsel %vm630_vm2, %v621_v9, %v623_v31 }
 0x117   : > { %v635_v3 = vadd.f32 %v634_v26, %v569_v30  ;;  %v638_v38 = vadd.f32 %v631_v34, %v572_v50  ;;  %v636_v44 = vadd.f32 %v633_v39, %v570_v36  ;;  %v637_v45 = vadd.f32 %v632_v6, %v571_v37 }
 0x119   : > { %v652_v33 = vadd.f32 %v650_v40, %v635_v3 }
 0x11b   : > { %v665_v35 = vadd.f32 %v657_v27, %v652_v33 }
 0x11d   : > { %671 = vst [vmem:[%s394_s29] sm:$0xff] %v665_v35  ;;  %v646_v25 = vpop.permute.xlu1 %645  ;;  %v644_v49 = vpop.permute.xlu0 %643 }
 0x11e   : > { %v651_v42 = vsel %vm647_vm3, %v646_v25, %v640_v58  ;;  %v648_v52 = vsel %vm647_vm3, %v644_v49, %v646_v25  ;;  %v649_v53 = vsel %vm647_vm3, %v642_v22, %v644_v49 }
 0x11f   : > { %v655_v43 = vadd.f32 %v651_v42, %v638_v38  ;;  %v653_v54 = vadd.f32 %v649_v53, %v636_v44  ;;  %v654_v55 = vadd.f32 %v648_v52, %v637_v45 }
 0x121   : > { %v668_v51 = vadd.f32 %v660_v41, %v655_v43  ;;  %v666_v56 = vadd.f32 %v658_v47, %v653_v54  ;;  %v667_v57 = vadd.f32 %v659_v48, %v654_v55 }
 0x123   : > { %674 = vst [vmem:[%s394_s29 + $0x18] sm:$0xff] %v668_v51 }
 0x124   : > { %672 = vst [vmem:[%s394_s29 + $0x8] sm:$0xff] %v666_v56 }
 0x125   : > { %673 = vst [vmem:[%s394_s29 + $0x10] sm:$0xff] %v667_v57 }
 0x126   : > { %1222 = shalt.err (!%p1219_p1)
}
 0x127   : > { %898 = dma.vmem_to_hbm [thread:$0]  (%p1589_p5), %s692_s17, 512, %s694_s12, %s676_s27  }
 0x128 PF: > { %p926_p0 = scmp.ge.s32.totalorder %s1357_s6, 2  ;;  %s705_s0 = sand.u32 1, %s1329_s24  }
 0x129   : > { %p1939_p6 = scmp.ne.s32.totalorder %s1922_s13, 0  ;;  %s706_s4 = scalar_lea.sflag [#allocation4], %s705_s0 }
 0x12b   : > { %p918_p3 = pnand %p926_p0, %p1939_p6 }
 0x12d   : > { %p919_p9 = pneg %p918_p3 }
 0x12f   : > { %1296 = dma.done.wait (%p919_p9), %s706_s4, 512  }
 0x130   : > { %1298 = vsyncadd (%p919_p9), %s706_s4, 4294966784  ;;  %s25_s6 = sadd.s32 1, %s1357_s6   ;;  %s1941_s21 = sld [smem:[#allocation17_spill]] }
 0x131   : > { %p1829_p2 = scmp.ge.s32.totalorder %s25_s6, 6   ;;  %s1942_s22 = sld [smem:[#allocation18_spill]] }
 0x132   : > { %s1943_s14 = sld [smem:[#allocation25_spill]]  ;;  %s1948_s18 = smov %s1309_s19 }
 0x133   : > { %s1944_s27 = sld [smem:[#allocation21_spill]]  ;;  %s1949_s19 = smov %s1313_s20 }
 0x134   : > { %s1945_s29 = sld [smem:[#allocation23_spill]]  ;;  %s1950_s20 = smov %s1625_s1 }
 0x135   : > { %s1946_s13 = sld [smem:[#allocation24_spill]]  ;;  %s1952_s24 = smov %s1333_s25 }
 0x136   : > { %s1953_s25 = smov %s1337_s26  ;;  %s1954_s26 = smov %s1570_s10 }
 0x137   : > { %s1955_s28 = smov %s1353_s30  ;;  %24 = sbr.rel (!%p1829_p2) target bundleno = 20 (0x14), region = 128 }
 0x138   : > { %s1951_s23 = smov %s1943_s14 }
 0x13b   : > { %s1956_s30 = smov %s1946_s13 }
 0x13c   :  { %712 = vsyncpa [#allocation3], 1 }
 0x13d   :  { %714 = vsyncpa [#allocation3 + $0x1], 1 }
 0x13e   :  { %715 = vsyncpa [#allocation6], 1 }
 0x13f   :  { %717 = vsyncpa [#allocation6 + $0x1], 1 }
 0x140   :  { %718 = vsyncpa [#allocation9], 1 }
 0x141   :  { %719 = vsyncpa [#allocation4], 1 }
 0x142   :  { %721 = vsyncpa [#allocation4 + $0x1], 1 }

</bundles_post_ra>
